<compile_context>
chip_gen: v7x
topology: tpu7x:2x2x1
jax: 0.10.0
libtpu: 0.0.40
codegen_flags: <defaults>
</compile_context>

<pallas_src>
import numpy as np
import jax
import jax.numpy as jnp
from jax import lax
from jax.experimental import pallas as pl
from jax.experimental.pallas import tpu as pltpu


def _adaptive_pool_matrix(in_size, out_size):
    """Row-stochastic matrix implementing nn.AdaptiveAvgPool1d semantics."""
    A = np.zeros((out_size, in_size), dtype=np.float32)
    for o in range(out_size):
        s = (o * in_size) // out_size
        e = -((-(o + 1) * in_size) // out_size)  # ceil((o+1)*in/out)
        A[o, s:e] = 1.0 / (e - s)
    return A


def _bilinear_matrix(out_size, in_size):
    """Matrix implementing F.interpolate(mode='bilinear', align_corners=False)
    along one axis (in_size -> out_size)."""
    A = np.zeros((out_size, in_size), dtype=np.float32)
    scale = in_size / out_size
    for o in range(out_size):
        src = (o + 0.5) * scale - 0.5
        if src < 0.0:
            src = 0.0
        i0 = min(int(np.floor(src)), in_size - 1)
        i1 = min(i0 + 1, in_size - 1)
        frac = src - i0
        A[o, i0] += 1.0 - frac
        A[o, i1] += frac
    return A


def _dca_kernel(x_ref, pooll_ref, w1g_ref, w2g_ref, w1l_ref, w2l_ref, up_ref,
                o_ref):
    # x block: (bb, C, HW); bb = 1 (per-batch grid) or B (folded batch).
    pool_l = pooll_ref[...]      # (9, HW)  adaptive 3x3 avg-pool weights
    up = up_ref[...]             # (9, HW)  bilinear 3x3 -> HW upsample weights
    w1g = w1g_ref[...]           # (Cr, C)
    w2g = w2g_ref[...]           # (C, Cr)
    w1l = w1l_ref[...]           # (Cr, C)
    w2l = w2l_ref[...]           # (C, Cr)

    nb = x_ref.shape[0]          # static
    for b in range(nb):          # static unroll (nb is 1 or a small B)
        x = x_ref[b].astype(jnp.float32)                 # (C, HW)

        # Global 1x1 adaptive pool: plain mean over the pixel (lane) axis.
        g = jnp.mean(x, axis=1, keepdims=True)           # (C, 1)

        # Local 3x3 adaptive pool: contract the pixel axis with (9, HW).
        loc = lax.dot_general(x, pool_l, (((1,), (1,)), ((), ())),
                              preferred_element_type=jnp.float32)  # (C, 9)

        # Bias-free 1x1-conv MLPs (tiny channel-mixing matmuls).
        hg = jnp.maximum(
            jnp.dot(w1g, g, preferred_element_type=jnp.float32), 0.0)   # (Cr,1)
        ag = jnp.dot(w2g, hg, preferred_element_type=jnp.float32)       # (C, 1)
        hl = jnp.maximum(
            jnp.dot(w1l, loc, preferred_element_type=jnp.float32), 0.0)  # (Cr,9)
        al = jnp.dot(w2l, hl, preferred_element_type=jnp.float32)        # (C, 9)

        comb = ag + al                                   # (C, 9)

        # Bilinear upsample as (C, 9) @ (9, HW): lane-dense MXU output.
        att = jnp.dot(comb, up, preferred_element_type=jnp.float32)      # (C, HW)

        o_ref[b] = (x * jax.nn.sigmoid(att)).astype(o_ref.dtype)


def _default_fold_batch(B):
    """Fold the batch into one grid step on single-TC chips; keep a parallel
    batch grid on multi-TC chips (v7x, v4/v5p megacore)."""
    try:
        kind = jax.devices()[0].device_kind.lower()
    except Exception:
        kind = ""
    multi_tc = ("v7" in kind) or ("v4" in kind) or ("v5p" in kind)
    return (not multi_tc) and B <= 8


def dual_channel_attention(x_nchw, w1g, w2g, w1l, w2l, *, io_dtype=None,
                           fold_batch=None):
    """x_nchw: (B, C, H, W).  Conv weights are (out, in, 1, 1), bias-free."""
    B, C, H, W = x_nchw.shape
    HW = H * W
    Cr = w1g.shape[0]

    if io_dtype is None:
        io_dtype = x_nchw.dtype
    if fold_batch is None:
        fold_batch = _default_fold_batch(B)

    # NCHW -> (B, C, HW): a free reshape, no transpose, no extra HBM pass.
    x_flat = x_nchw.reshape(B, C, HW).astype(io_dtype)

    # Static pooling / interpolation matrices, both stored lane-dense (9, HW).
    pool_l = jnp.asarray(
        np.kron(_adaptive_pool_matrix(H, 3), _adaptive_pool_matrix(W, 3)))
    up = jnp.asarray(
        np.kron(_bilinear_matrix(H, 3).T, _bilinear_matrix(W, 3).T))

    # 1x1 conv weights (out, in, 1, 1) -> (out, in); used as-is (no transpose).
    w1g2 = w1g.reshape(Cr, C).astype(jnp.float32)
    w2g2 = w2g.reshape(C, Cr).astype(jnp.float32)
    w1l2 = w1l.reshape(Cr, C).astype(jnp.float32)
    w2l2 = w2l.reshape(C, Cr).astype(jnp.float32)

    if fold_batch:
        grid = (1,)
        bb = B
        semantics = ("arbitrary",)
    else:
        grid = (B,)
        bb = 1
        semantics = ("parallel",)

    def const(shape):
        return pl.BlockSpec(shape, lambda b, _n=len(shape): (0,) * _n)

    out = pl.pallas_call(
        _dca_kernel,
        out_shape=jax.ShapeDtypeStruct((B, C, HW), io_dtype),
        grid=grid,
        in_specs=[
            pl.BlockSpec((bb, C, HW), lambda b: (b, 0, 0)),  # x
            const((9, HW)),    # local pool matrix
            const((Cr, C)),    # fc1_global
            const((C, Cr)),    # fc2_global
            const((Cr, C)),    # fc1_local
            const((C, Cr)),    # fc2_local
            const((9, HW)),    # bilinear upsample matrix
        ],
        out_specs=pl.BlockSpec((bb, C, HW), lambda b: (b, 0, 0)),
        compiler_params=pltpu.CompilerParams(
            dimension_semantics=semantics),
    )(x_flat, pool_l, w1g2, w2g2, w1l2, w2l2, up)

    # (B, C, HW) -> NCHW: again a free reshape.
    return out.reshape(B, C, H, W)


def reference(x, w1g, w2g, w1l, w2l):
    """Pure-JAX reference of the same forward semantics (NCHW, f32)."""
    B, C, H, W = x.shape
    Cr = w1g.shape[0]
    g = jnp.mean(x, axis=(2, 3), keepdims=True)                       # (B,C,1,1)
    Ah = jnp.asarray(_adaptive_pool_matrix(H, 3))
    Aw = jnp.asarray(_adaptive_pool_matrix(W, 3))
    loc = jnp.einsum('ih,bchw,jw->bcij', Ah, x, Aw)                    # (B,C,3,3)

    def mlp(z, w1, w2):
        h = jnp.maximum(jnp.einsum('oc,bcij->boij', w1.reshape(Cr, C), z), 0.0)
        return jnp.einsum('oc,bcij->boij', w2.reshape(C, Cr), h)

    comb = mlp(g, w1g, w2g) + mlp(loc, w1l, w2l)                       # (B,C,3,3)
    Bh = jnp.asarray(_bilinear_matrix(H, 3))
    Bw = jnp.asarray(_bilinear_matrix(W, 3))
    upsampled = jnp.einsum('hi,bcij,wj->bchw', Bh, comb, Bw)           # (B,C,H,W)
    return x * jax.nn.sigmoid(upsampled)


if __name__ == "__main__":
    B, C, H, W = 2, 32, 16, 16
    reduction = 16
    Cr = C // reduction

    key = jax.random.PRNGKey(0)
    kx, k1, k2, k3, k4 = jax.random.split(key, 5)
    x = jax.random.normal(kx, (B, C, H, W), dtype=jnp.float32)
    # Deterministic synthetic conv weights (shapes from module __init__).
    w1g = 0.1 * jax.random.normal(k1, (Cr, C, 1, 1), dtype=jnp.float32)
    w2g = 0.1 * jax.random.normal(k2, (C, Cr, 1, 1), dtype=jnp.float32)
    w1l = 0.1 * jax.random.normal(k3, (Cr, C, 1, 1), dtype=jnp.float32)
    w2l = 0.1 * jax.random.normal(k4, (C, Cr, 1, 1), dtype=jnp.float32)

    ref = reference(x, w1g, w2g, w1l, w2l)

    # f32, folded-batch path (single-TC style).
    out_fold = dual_channel_attention(x, w1g, w2g, w1l, w2l, fold_batch=True)
    out_fold = jax.block_until_ready(out_fold)
    assert out_fold.shape == x.shape
    np.testing.assert_allclose(np.asarray(out_fold), np.asarray(ref),
                               rtol=1e-4, atol=1e-4)

    # f32, per-batch parallel-grid path (multi-TC style).
    out_grid = dual_channel_attention(x, w1g, w2g, w1l, w2l, fold_batch=False)
    out_grid = jax.block_until_ready(out_grid)
    assert out_grid.shape == x.shape
    np.testing.assert_allclose(np.asarray(out_grid), np.asarray(ref),
                               rtol=1e-4, atol=1e-4)

    # bf16 I/O smoke run (memory-bound win on v6e/v7x; math stays f32 in-kernel).
    out_bf16 = dual_channel_attention(x, w1g, w2g, w1l, w2l,
                                      io_dtype=jnp.bfloat16)
    out_bf16 = jax.block_until_ready(out_bf16)
    assert out_bf16.shape == x.shape
    assert bool(jnp.all(jnp.isfinite(out_bf16.astype(jnp.float32))))

    print("KERNEL_OK")
</pallas_src>

<mosaic_0001>
module attributes {stable_mosaic.version = 11 : i64} {
  func.func @_dca_kernel(%arg0: i32, %arg1: memref<2x32x256xf32, #tpu.memory_space<vmem>>, %arg2: memref<9x256xf32, #tpu.memory_space<vmem>>, %arg3: memref<2x32xf32, #tpu.memory_space<vmem>>, %arg4: memref<32x2xf32, #tpu.memory_space<vmem>>, %arg5: memref<2x32xf32, #tpu.memory_space<vmem>>, %arg6: memref<32x2xf32, #tpu.memory_space<vmem>>, %arg7: memref<9x256xf32, #tpu.memory_space<vmem>>, %arg8: memref<2x32x256xf32, #tpu.memory_space<vmem>>) attributes {dimension_semantics = [#tpu.dimension_semantics<arbitrary>], iteration_bounds = array<i64: 1>, scalar_prefetch = 0 : i64, scratch_operands = 0 : i64, tpu.core_type = #tpu.core_type<tc>, window_params = [{transform_indices = @transform_0, window_bounds = array<i64: 2, 32, 256>}, {pipeline_mode = #tpu.pipeline_mode<synchronous>, transform_indices = @transform_1, window_bounds = array<i64: 9, 256>}, {pipeline_mode = #tpu.pipeline_mode<synchronous>, transform_indices = @transform_2, window_bounds = array<i64: 2, 32>}, {pipeline_mode = #tpu.pipeline_mode<synchronous>, transform_indices = @transform_3, window_bounds = array<i64: 32, 2>}, {pipeline_mode = #tpu.pipeline_mode<synchronous>, transform_indices = @transform_4, window_bounds = array<i64: 2, 32>}, {pipeline_mode = #tpu.pipeline_mode<synchronous>, transform_indices = @transform_5, window_bounds = array<i64: 32, 2>}, {pipeline_mode = #tpu.pipeline_mode<synchronous>, transform_indices = @transform_6, window_bounds = array<i64: 9, 256>}, {transform_indices = @transform_7, window_bounds = array<i64: 2, 32, 256>}]} {
    %c0 = arith.constant 0 : index
    %c0_0 = arith.constant 0 : index
    %0 = vector.load %arg2[%c0, %c0_0] : memref<9x256xf32, #tpu.memory_space<vmem>>, vector<9x256xf32>
    %c0_1 = arith.constant 0 : index
    %c0_2 = arith.constant 0 : index
    %1 = vector.load %arg7[%c0_1, %c0_2] : memref<9x256xf32, #tpu.memory_space<vmem>>, vector<9x256xf32>
    %c0_3 = arith.constant 0 : index
    %c0_4 = arith.constant 0 : index
    %2 = vector.load %arg3[%c0_3, %c0_4] : memref<2x32xf32, #tpu.memory_space<vmem>>, vector<2x32xf32>
    %c0_5 = arith.constant 0 : index
    %c0_6 = arith.constant 0 : index
    %3 = vector.load %arg4[%c0_5, %c0_6] : memref<32x2xf32, #tpu.memory_space<vmem>>, vector<32x2xf32>
    %c0_7 = arith.constant 0 : index
    %c0_8 = arith.constant 0 : index
    %4 = vector.load %arg5[%c0_7, %c0_8] : memref<2x32xf32, #tpu.memory_space<vmem>>, vector<2x32xf32>
    %c0_9 = arith.constant 0 : index
    %c0_10 = arith.constant 0 : index
    %5 = vector.load %arg6[%c0_9, %c0_10] : memref<32x2xf32, #tpu.memory_space<vmem>>, vector<32x2xf32>
    %c0_11 = arith.constant 0 : index
    %c0_12 = arith.constant 0 : index
    %c0_13 = arith.constant 0 : index
    %6 = vector.load %arg1[%c0_11, %c0_12, %c0_13] : memref<2x32x256xf32, #tpu.memory_space<vmem>>, vector<1x32x256xf32>
    %7 = vector.shape_cast %6 : vector<1x32x256xf32> to vector<32x256xf32>
    %cst = arith.constant dense<0.000000e+00> : vector<32xf32>
    %8 = vector.multi_reduction <add>, %7, %cst [1] : vector<32x256xf32> to vector<32xf32>
    %9 = vector.shape_cast %8 : vector<32xf32> to vector<32x1xf32>
    %cst_14 = arith.constant 2.560000e+02 : f32
    %10 = vector.broadcast %cst_14 : f32 to vector<32x1xf32>
    %11 = arith.divf %9, %10 : vector<32x1xf32>
    %cst_15 = arith.constant dense<0.000000e+00> : vector<32x9xf32>
    %12 = tpu.matmul %7, %0, %cst_15 {dimension_numbers = #tpu.dot_dimension_numbers<[1], [1], [0], [0], [0, 0, 1, 0], [], []>} : vector<32x256xf32>, vector<9x256xf32>, vector<32x9xf32> -> vector<32x9xf32>
    %cst_16 = arith.constant dense<0.000000e+00> : vector<2x1xf32>
    %13 = tpu.matmul %2, %11, %cst_16 {dimension_numbers = #tpu.dot_dimension_numbers<[1], [0], [0], [1], [0, 0, 1, 1], [], []>} : vector<2x32xf32>, vector<32x1xf32>, vector<2x1xf32> -> vector<2x1xf32>
    %cst_17 = arith.constant 0.000000e+00 : f32
    %14 = vector.broadcast %cst_17 : f32 to vector<2x1xf32>
    %15 = arith.maximumf %13, %14 : vector<2x1xf32>
    %cst_18 = arith.constant dense<0.000000e+00> : vector<32x1xf32>
    %16 = tpu.matmul %3, %15, %cst_18 {dimension_numbers = #tpu.dot_dimension_numbers<[1], [0], [0], [1], [0, 0, 1, 1], [], []>} : vector<32x2xf32>, vector<2x1xf32>, vector<32x1xf32> -> vector<32x1xf32>
    %cst_19 = arith.constant dense<0.000000e+00> : vector<2x9xf32>
    %17 = tpu.matmul %4, %12, %cst_19 {dimension_numbers = #tpu.dot_dimension_numbers<[1], [0], [0], [1], [0, 0, 1, 1], [], []>} : vector<2x32xf32>, vector<32x9xf32>, vector<2x9xf32> -> vector<2x9xf32>
    %cst_20 = arith.constant 0.000000e+00 : f32
    %18 = vector.broadcast %cst_20 : f32 to vector<2x9xf32>
    %19 = arith.maximumf %17, %18 : vector<2x9xf32>
    %cst_21 = arith.constant dense<0.000000e+00> : vector<32x9xf32>
    %20 = tpu.matmul %5, %19, %cst_21 {dimension_numbers = #tpu.dot_dimension_numbers<[1], [0], [0], [1], [0, 0, 1, 1], [], []>} : vector<32x2xf32>, vector<2x9xf32>, vector<32x9xf32> -> vector<32x9xf32>
    %21 = vector.broadcast %16 : vector<32x1xf32> to vector<32x9xf32>
    %22 = arith.addf %21, %20 : vector<32x9xf32>
    %cst_22 = arith.constant dense<0.000000e+00> : vector<32x256xf32>
    %23 = tpu.matmul %22, %1, %cst_22 {dimension_numbers = #tpu.dot_dimension_numbers<[1], [0], [0], [1], [0, 0, 1, 1], [], []>} : vector<32x9xf32>, vector<9x256xf32>, vector<32x256xf32> -> vector<32x256xf32>
    %24 = arith.negf %23 : vector<32x256xf32>
    %25 = math.exp %24 : vector<32x256xf32>
    %cst_23 = arith.constant 1.000000e+00 : f32
    %26 = vector.broadcast %cst_23 : f32 to vector<32x256xf32>
    %27 = arith.addf %26, %25 : vector<32x256xf32>
    %28 = arith.divf %26, %27 : vector<32x256xf32>
    %29 = arith.mulf %7, %28 : vector<32x256xf32>
    %c0_24 = arith.constant 0 : index
    %c0_25 = arith.constant 0 : index
    %c0_26 = arith.constant 0 : index
    %30 = vector.load %arg8[%c0_24, %c0_25, %c0_26] : memref<2x32x256xf32, #tpu.memory_space<vmem>>, vector<1x32x256xf32>
    %31 = vector.shape_cast %30 : vector<1x32x256xf32> to vector<32x256xf32>
    %32 = vector.shape_cast %29 : vector<32x256xf32> to vector<1x32x256xf32>
    tpu.vector_store %arg8[%c0_24, %c0_25, %c0_26], %32 {strides = array<i32>} : memref<2x32x256xf32, #tpu.memory_space<vmem>>, vector<1x32x256xf32>,
    %c1 = arith.constant 1 : index
    %c0_27 = arith.constant 0 : index
    %c0_28 = arith.constant 0 : index
    %33 = vector.load %arg1[%c1, %c0_27, %c0_28] : memref<2x32x256xf32, #tpu.memory_space<vmem>>, vector<1x32x256xf32>
    %34 = vector.shape_cast %33 : vector<1x32x256xf32> to vector<32x256xf32>
    %cst_29 = arith.constant dense<0.000000e+00> : vector<32xf32>
    %35 = vector.multi_reduction <add>, %34, %cst_29 [1] : vector<32x256xf32> to vector<32xf32>
    %36 = vector.shape_cast %35 : vector<32xf32> to vector<32x1xf32>
    %cst_30 = arith.constant 2.560000e+02 : f32
    %37 = vector.broadcast %cst_30 : f32 to vector<32x1xf32>
    %38 = arith.divf %36, %37 : vector<32x1xf32>
    %cst_31 = arith.constant dense<0.000000e+00> : vector<32x9xf32>
    %39 = tpu.matmul %34, %0, %cst_31 {dimension_numbers = #tpu.dot_dimension_numbers<[1], [1], [0], [0], [0, 0, 1, 0], [], []>} : vector<32x256xf32>, vector<9x256xf32>, vector<32x9xf32> -> vector<32x9xf32>
    %cst_32 = arith.constant dense<0.000000e+00> : vector<2x1xf32>
    %40 = tpu.matmul %2, %38, %cst_32 {dimension_numbers = #tpu.dot_dimension_numbers<[1], [0], [0], [1], [0, 0, 1, 1], [], []>} : vector<2x32xf32>, vector<32x1xf32>, vector<2x1xf32> -> vector<2x1xf32>
    %cst_33 = arith.constant 0.000000e+00 : f32
    %41 = vector.broadcast %cst_33 : f32 to vector<2x1xf32>
    %42 = arith.maximumf %40, %41 : vector<2x1xf32>
    %cst_34 = arith.constant dense<0.000000e+00> : vector<32x1xf32>
    %43 = tpu.matmul %3, %42, %cst_34 {dimension_numbers = #tpu.dot_dimension_numbers<[1], [0], [0], [1], [0, 0, 1, 1], [], []>} : vector<32x2xf32>, vector<2x1xf32>, vector<32x1xf32> -> vector<32x1xf32>
    %cst_35 = arith.constant dense<0.000000e+00> : vector<2x9xf32>
    %44 = tpu.matmul %4, %39, %cst_35 {dimension_numbers = #tpu.dot_dimension_numbers<[1], [0], [0], [1], [0, 0, 1, 1], [], []>} : vector<2x32xf32>, vector<32x9xf32>, vector<2x9xf32> -> vector<2x9xf32>
    %cst_36 = arith.constant 0.000000e+00 : f32
    %45 = vector.broadcast %cst_36 : f32 to vector<2x9xf32>
    %46 = arith.maximumf %44, %45 : vector<2x9xf32>
    %cst_37 = arith.constant dense<0.000000e+00> : vector<32x9xf32>
    %47 = tpu.matmul %5, %46, %cst_37 {dimension_numbers = #tpu.dot_dimension_numbers<[1], [0], [0], [1], [0, 0, 1, 1], [], []>} : vector<32x2xf32>, vector<2x9xf32>, vector<32x9xf32> -> vector<32x9xf32>
    %48 = vector.broadcast %43 : vector<32x1xf32> to vector<32x9xf32>
    %49 = arith.addf %48, %47 : vector<32x9xf32>
    %cst_38 = arith.constant dense<0.000000e+00> : vector<32x256xf32>
    %50 = tpu.matmul %49, %1, %cst_38 {dimension_numbers = #tpu.dot_dimension_numbers<[1], [0], [0], [1], [0, 0, 1, 1], [], []>} : vector<32x9xf32>, vector<9x256xf32>, vector<32x256xf32> -> vector<32x256xf32>
    %51 = arith.negf %50 : vector<32x256xf32>
    %52 = math.exp %51 : vector<32x256xf32>
    %cst_39 = arith.constant 1.000000e+00 : f32
    %53 = vector.broadcast %cst_39 : f32 to vector<32x256xf32>
    %54 = arith.addf %53, %52 : vector<32x256xf32>
    %55 = arith.divf %53, %54 : vector<32x256xf32>
    %56 = arith.mulf %34, %55 : vector<32x256xf32>
    %c1_40 = arith.constant 1 : index
    %c0_41 = arith.constant 0 : index
    %c0_42 = arith.constant 0 : index
    %57 = vector.load %arg8[%c1_40, %c0_41, %c0_42] : memref<2x32x256xf32, #tpu.memory_space<vmem>>, vector<1x32x256xf32>
    %58 = vector.shape_cast %57 : vector<1x32x256xf32> to vector<32x256xf32>
    %59 = vector.shape_cast %56 : vector<32x256xf32> to vector<1x32x256xf32>
    tpu.vector_store %arg8[%c1_40, %c0_41, %c0_42], %59 {strides = array<i32>} : memref<2x32x256xf32, #tpu.memory_space<vmem>>, vector<1x32x256xf32>,
    return
  }
  func.func @transform_0(%arg0: i32) -> (i32, i32, i32) {
    %c0_i32 = arith.constant 0 : i32
    %c0_i32_0 = arith.constant 0 : i32
    %c0_i32_1 = arith.constant 0 : i32
    return %arg0, %c0_i32, %c0_i32_0 : i32, i32, i32
  }
  func.func @transform_1(%arg0: i32) -> (i32, i32) {
    %c0_i32 = arith.constant 0 : i32
    %c0_i32_0 = arith.constant 0 : i32
    %c0_i32_1 = arith.constant 0 : i32
    return %c0_i32, %c0_i32_0 : i32, i32
  }
  func.func @transform_2(%arg0: i32) -> (i32, i32) {
    %c0_i32 = arith.constant 0 : i32
    %c0_i32_0 = arith.constant 0 : i32
    %c0_i32_1 = arith.constant 0 : i32
    return %c0_i32, %c0_i32_0 : i32, i32
  }
  func.func @transform_3(%arg0: i32) -> (i32, i32) {
    %c0_i32 = arith.constant 0 : i32
    %c0_i32_0 = arith.constant 0 : i32
    %c0_i32_1 = arith.constant 0 : i32
    return %c0_i32, %c0_i32_0 : i32, i32
  }
  func.func @transform_4(%arg0: i32) -> (i32, i32) {
    %c0_i32 = arith.constant 0 : i32
    %c0_i32_0 = arith.constant 0 : i32
    %c0_i32_1 = arith.constant 0 : i32
    return %c0_i32, %c0_i32_0 : i32, i32
  }
  func.func @transform_5(%arg0: i32) -> (i32, i32) {
    %c0_i32 = arith.constant 0 : i32
    %c0_i32_0 = arith.constant 0 : i32
    %c0_i32_1 = arith.constant 0 : i32
    return %c0_i32, %c0_i32_0 : i32, i32
  }
  func.func @transform_6(%arg0: i32) -> (i32, i32) {
    %c0_i32 = arith.constant 0 : i32
    %c0_i32_0 = arith.constant 0 : i32
    %c0_i32_1 = arith.constant 0 : i32
    return %c0_i32, %c0_i32_0 : i32, i32
  }
  func.func @transform_7(%arg0: i32) -> (i32, i32, i32) {
    %c0_i32 = arith.constant 0 : i32
    %c0_i32_0 = arith.constant 0 : i32
    %c0_i32_1 = arith.constant 0 : i32
    return %arg0, %c0_i32, %c0_i32_0 : i32, i32, i32
  }
}

</mosaic_0001>

<bundles_post_ra>
// kernel: tpu_custom_call.1
= control target key start
LH: loop header
LB: loop body
LE: loop exit
PB: predicated region body
PF: predicated region fallthrough
CT: control target
= control target key end

     0   :  { %12 = vsyncpa [#allocation3], 0  ;;  %s2024_s0 = inlined_call_operand.hbm [shape: f32[2,32,256], index: 0, kind: input, shape index: {}]   ;;  %s2025_s1 = inlined_call_operand.vmem [shape: f32[9,256], index: 1, kind: input, shape index: {}]   ;;  %s2026_s2 = inlined_call_operand.vmem [shape: f32[2,32], index: 2, kind: input, shape index: {}]   ;;  %s2027_s3 = inlined_call_operand.vmem [shape: f32[32,2], index: 3, kind: input, shape index: {}]   ;;  %s2028_s4 = inlined_call_operand.vmem [shape: f32[2,32], index: 4, kind: input, shape index: {}]   ;;  %s2029_s5 = inlined_call_operand.vmem [shape: f32[32,2], index: 5, kind: input, shape index: {}]   ;;  %s2030_s6 = inlined_call_operand.vmem [shape: f32[9,256], index: 6, kind: input, shape index: {}]   ;;  %s2031_s7 = inlined_call_operand.hbm [shape: f32[2,32,256], index: 7, kind: output, shape index: {}]  }
   0x1   :  { %13 = vsyncpa [#allocation4], 0  ;;  %s1687_s24 = smov [#allocation2]   ;;  %s1639_s28 = scalar_lea.hbm %s2024_s0, 2048 }
   0x2   :  { %s19_s25 = sshll.u32 %s1687_s24, 4  ;;  %p1640_p0 = scmp.ne.s32.totalorder %s2024_s0, %s1639_s28  ;;  %s20_s25 = int_to_ptr.vmem [resolvable:$true] %s19_s25 }
   0x3   :  { %p1643_p1 = scmp.lt.u32.totalorder %s1639_s28, %s2024_s0 }
   0x5   :  { %p1645_p2 = pnand %p1643_p1, %p1640_p0 }
   0x7   :  { %1648 = shalt.err (!%p1645_p2)
}
   0x8   :  { %s1649_s10 = scalar_lea.vmem %s20_s25, 2048  ;;  %p1654_p4 = scmp.lt.s32.totalorder %s20_s25, %s20_s25 }
   0x9   :  { %p1650_p3 = scmp.ne.s32.totalorder %s20_s25, %s1649_s10  ;;  %p1655_p5 = scmp.lt.s32.totalorder %s1649_s10, %s1649_s10 }
   0xb   :  { %p1656_p6 = por %p1655_p5, %p1654_p4 }
   0xd   :  { %p1657_p7 = pnand %p1656_p6, %p1650_p3 }
   0xf   :  { %1660 = shalt.err (!%p1657_p7)
}
  0x10   :  { %s1688_s11 = smov 256   ;;  %s1689_s12 = smov 16  }
  0x11   :  { %25 = dma.hbm_to_vmem [thread:$0]  %s2024_s0, 2048, %s20_s25, [#allocation3], %s1688_s11, %s1688_s11, %s1689_s12  }
  0x12   :  { %1683 = dma.done.wait [#allocation3], 2048  }
  0x13   :  { %1684 = vsyncadd [#allocation3], 4294965248  ;;  %v1751_v0 = vld [vmem:[#allocation2 + $0x20] sm:$0xff]  ;;  %v1753_v1 = vld [vmem:[#allocation2 + $0x28] sm:$0xff]  ;;  %v1690_v18 = vmov 0.0|0.0   ;;  %vm1691_vm0 = vmmov 0  }
  0x14   :  { %v1755_v2 = vld [vmem:[#allocation2] sm:$0xff]  ;;  %v73_v3 = vadd.f32 %v1753_v1, %v1751_v0  ;;  %v1759_v4 = vld [vmem:[#allocation2 + $0x8] sm:$0xff]  ;;  %v1761_v5 = vld [vmem:[#allocation2 + $0x30] sm:$0xff]  ;;  %v1692_v19 = vmov 0.0   ;;  %vm169_vm1 = vcmask 261120   ;;  %vm244_vm2 = vcmask 15360  }
  0x15   :  { %v1763_v6 = vld [vmem:[#allocation2 + $0x38] sm:$0xff]  ;;  %v67_v7 = vadd.f32 %v1759_v4, %v1755_v2  ;;  %v1767_v8 = vld [vmem:[#allocation2 + $0x10] sm:$0xff]  ;;  %v42_v10 = vld [vmem:[%s2025_s1 + $0x8] sm:$0xff]  ;;  %148 = vmatprep.mubr.f32.mxu0 %v1759_v4  ;;  %v1693_v47 = vmov 0   ;;  %vm257_vm3 = vcmask 1041408   ;;  %vm557_vm4 = vcmask 1040384  }
  0x16   :  { %v1769_v9 = vld [vmem:[#allocation2 + $0x18] sm:$0xff]  ;;  %74 = vadd.xlane.f32.xlu1 %v73_v3  ;;  %v76_v11 = vadd.f32 %v1763_v6, %v1761_v5  ;;  %v41_v13 = vld [vmem:[%s2025_s1] sm:$0xff]  ;;  %v43_v14 = vld [vmem:[%s2025_s1 + $0x10] sm:$0x1]  ;;  %1574 = vset.pattern.permute.xlu0 %v1693_v47  ;;  %vm1694_vm5 = vmmov 1   ;;  %vm544_vm7 = vcmask 72704  }
  0x17   :  { %v44_v12 = vld [vmem:[%s2025_s1 + $0x18] sm:$0x1]  ;;  %68 = vadd.xlane.f32.xlu0 %v67_v7  ;;  %v70_v15 = vadd.f32 %v1769_v9, %v1767_v8  ;;  %v1790_v17 = vpack.c.bf16 %v43_v14, %v41_v13  ;;  %v1808_v30 = vld [vmem:[%s2026_s2] sm:$0x3]  ;;  %v1821_v43 = vld [vmem:[#allocation2 + $0x48] sm:$0xff]  ;;  %1573 = vset.pattern.permute.xlu1 %v1693_v47 }
  0x18   :  { %v1788_v16 = vpack.c.bf16 %v44_v12, %v42_v10  ;;  %v1815_v41 = vld [vmem:[%s2027_s3] sm:$0xff]  ;;  %v1823_v44 = vld [vmem:[#allocation2 + $0x50] sm:$0xff]  ;;  %v1827_v46 = vld [vmem:[#allocation2 + $0x58] sm:$0xff] }
  0x19   :  { %1457 = vmatprep.mubr.msk.f32.mxu1 %vm244_vm2, %v1815_v41  ;;  %v1819_v42 = vld [vmem:[#allocation2 + $0x40] sm:$0xff]  ;;  %v729_v48 = vadd.f32 %v1827_v46, %v1823_v44  ;;  %v1833_v50 = vld [vmem:[#allocation2 + $0x68] sm:$0xff]  ;;  %v1846_v56 = vld [vmem:[%s2027_s3 + $0x10] sm:$0xff] }
  0x1a   :  { %1521 = vmatprep.subr.bf16.mxu0 %v1788_v16  ;;  %77 = vadd.xlane.f32.xlu1 %v76_v11  ;;  %v726_v45 = vadd.f32 %v1821_v43, %v1819_v42  ;;  %v1831_v49 = vld [vmem:[#allocation2 + $0x60] sm:$0xff]  ;;  %v1840_v55 = vld [vmem:[%s2027_s3 + $0x8] sm:$0xff]  ;;  %v1857_v57 = vld [vmem:[%s2027_s3 + $0x18] sm:$0xff] }
  0x1b   :  { %1523 = vmatpush1.bf16.xpose.msra.mxu0 %v1790_v17  ;;  %71 = vadd.xlane.f32.xlu0 %v70_v15  ;;  %v732_v51 = vadd.f32 %v1833_v50, %v1831_v49  ;;  %v1867_v58 = vld [vmem:[%s2028_s4] sm:$0x3]  ;;  %v1879_v11 = vld [vmem:[%s2029_s5 + $0x8] sm:$0xff]  ;;  %v1885_v12 = vld [vmem:[%s2029_s5 + $0x10] sm:$0xff] }
  0x1c   :  { %1524 = vmatprep.subr.bf16.mxu0 %v1690_v18  ;;  %v55_v59 = vld [vmem:[%s2029_s5] sm:$0xff]  ;;  %v1896_v13 = vld [vmem:[%s2029_s5 + $0x18] sm:$0xff]  ;;  %v1902_v14 = vld [vmem:[#allocation2 + $0x70] sm:$0xff] }
  0x1d   :  { %v1904_v15 = vld [vmem:[#allocation2 + $0x78] sm:$0xff]  ;;  %vm1924_vm6 = vmpackc.low %vm557_vm4, %vm1694_vm5 }
  0x1e   :  { %727 = vadd.xlane.f32.xlu1 %v726_v45 }
  0x22   :  { %149 = vmatmul.mubr.f32.vlgmr.msra.gmra.mrb[0].mxu0 %v1755_v2  ;;  %730 = vadd.xlane.f32.xlu1 %v729_v48 }
  0x23   :  { %153 = vmatprep.mubr.f32.mxu0 %v1769_v9 }
  0x26   :  { %154 = vmatmul.mubr.f32.gmra.mrb[2].mxu0 %v1767_v8  ;;  %733 = vadd.xlane.f32.xlu1 %v732_v51 }
  0x27   :  { %158 = vmatprep.mubr.f32.mxu0 %v1753_v1 }
  0x2a   :  { %159 = vmatmul.mubr.f32.gmra.mrb[4].mxu0 %v1751_v0 }
  0x2b   :  { %163 = vmatprep.mubr.f32.mxu0 %v1763_v6 }
  0x2e   :  { %164 = vmatmul.mubr.f32.gmra.mrb[6].mxu0 %v1761_v5 }
  0x2f   :  { %1452 = vmatprep.mubr.msk.f32.mxu0 %vm1691_vm0, %v1692_v19 }
  0xa3   :  { %v75_v20 = vpop.xlane.xlu1 %74 }
  0xa4   :  { %v69_v21 = vpop.xlane.xlu0 %68  ;;  %v82_v26 = vmul.f32 0.00390625, %v75_v20  ;;  %v48_v20 = vld [vmem:[%s2030_s6 + $0x18] sm:$0x1] }
  0xa5   :  { %v80_v24 = vmul.f32 0.00390625, %v69_v21 }
  0xa7   :  { %v78_v22 = vpop.xlane.xlu1 %77 }
  0xa8   :  { %v72_v23 = vpop.xlane.xlu0 %71  ;;  %v83_v27 = vmul.f32 0.00390625, %v78_v22 }
  0xa9   :  { %v81_v25 = vmul.f32 0.00390625, %v72_v23  ;;  %v45_v23 = vld [vmem:[%s2030_s6] sm:$0xff] }
  0xaa   :  { %v1528_v29 = vpack.c.bf16 %v83_v27, %v82_v26 }
  0xab   :  { %v1525_v28 = vpack.c.bf16 %v81_v25, %v80_v24  ;;  %v47_v24 = vld [vmem:[%s2030_s6 + $0x10] sm:$0x1]  ;;  %v728_v26 = vpop.xlane.xlu1 %727 }
  0xac   :  { %v1937_v25 = vpack.c.bf16 %v47_v24, %v45_v23 }
  0xad   :  { %1526 = vmatpush3.bf16.msra.mxu0 %v1525_v28 }
  0xae   :  { %1527 = vmatprep.subr.bf16.mxu0 %v1690_v18 }
  0xaf   :  { %v731_v27 = vpop.xlane.xlu1 %730 }
  0xb1   :  { %1529 = vmatpush3.bf16.msra.mxu0 %v1528_v29 }
  0xb3   :  { %v734_v28 = vpop.xlane.xlu1 %733 }
  0xb4   :  { %1453 = vmatmul.mubr.msk.f32.vlgmr.msra.gmra.mrb[8].mxu0 %vm169_vm1, %v1808_v30 }
  0xb5   :  { %1476 = vmatprep.mubr.msk.f32.mxu0 %vm244_vm2, %v55_v59 }
  0xf5   :  { %v150_v31 = vpop.f32.mrb[0].mxu0 }
  0xf6   :  { %v152_v32 = vpop.f32.mrb[1].mxu0 }
  0xf7   :  { %v739_v32 = vmul.f32 0.00390625, %v731_v27 }
  0xf9   :  { %v155_v33 = vpop.f32.mrb[2].mxu0 }
  0xfa   :  { %v1531_v34 = vpack.c.bf16 %v155_v33, %v150_v31  ;;  %v157_v35 = vpop.f32.mrb[3].mxu0  ;;  %v738_v31 = vmul.f32 0.00390625, %v728_v26 }
  0xfd   :  { %v160_v36 = vpop.f32.mrb[4].mxu0 }
  0xfe   :  { %v162_v37 = vpop.f32.mrb[5].mxu0 }
  0xff   :  { %v1547_v37 = vpack.c.bf16 %v739_v32, %v738_v31 }
 0x101   :  { %v165_v38 = vpop.f32.mrb[6].mxu0 }
 0x102   :  { %v1534_v39 = vpack.c.bf16 %v165_v38, %v160_v36  ;;  %v167_v40 = vpop.f32.mrb[7].mxu0  ;;  %v740_v38 = vmul.f32 0.00390625, %v734_v28 }
 0x187   :  { %v239_v52 = vpop.f32.mrb[8].mxu0 }
 0x188   :  { %v243_v53 = vmax.f32 %v239_v52, 0.0  ;;  %v1454_v54 = vpop.f32.mrb[9].mxu0 }
 0x18a   :  { %1455 = vmatprep.subr.msk.mxu1 %vm257_vm3, %v243_v53 }
 0x18b   :  { %1456 = vmatpush3.msk.msra.mxu1 %vm257_vm3, %v243_v53 }
 0x18c   :  { %1458 = vmatmul.mubr.msk.f32.vlgmr.msra.gmra.mrb[0].mxu1 %vm244_vm2, %v1840_v55  ;;  %1530 = vmatprep.subr.bf16.mxu1 %v1690_v18 }
 0x18d   :  { %1532 = vmatpush3.bf16.msra.mxu1 %v1531_v34  ;;  %1460 = vmatprep.mubr.msk.f32.mxu1 %vm244_vm2, %v1846_v56 }
 0x18e   :  { %1533 = vmatprep.subr.bf16.mxu1 %v1690_v18 }
 0x190   :  { %1461 = vmatmul.mubr.msk.f32.gmra.mrb[2].mxu1 %vm244_vm2, %v1857_v57 }
 0x191   :  { %1535 = vmatpush3.bf16.msra.mxu1 %v1534_v39  ;;  %1471 = vmatprep.mubr.msk.f32.mxu1 %vm1691_vm0, %v1692_v19 }
 0x194   :  { %1472 = vmatmul.mubr.msk.f32.vlgmr.msra.gmra.mrb[4].mxu1 %vm169_vm1, %v1867_v58 }
 0x195   :  { %628 = vmatprep.mubr.f32.mxu1 %v1692_v19 }
 0x25f   :  { %v1459_v60 = vpop.f32.mrb[0].mxu1 }
 0x260   :  { %527 = vperm.xlu1 %1573, %v1459_v60   ;;  %v327_v61 = vpop.f32.mrb[1].mxu1 }
 0x261   :  { %522 = vperm.xlu0 %1574, %v327_v61  }
 0x263   :  { %v1462_v62 = vpop.f32.mrb[2].mxu1 }
 0x264   :  { %v337_v63 = vpop.f32.mrb[3].mxu1 }
 0x265   :  { %532 = vperm.xlu1 %1573, %v337_v63  }
 0x267   :  { %v415_v3 = vpop.f32.mrb[4].mxu1 }
 0x268   :  { %v419_v7 = vmax.f32 %v415_v3, 0.0  ;;  %v1473_v10 = vpop.f32.mrb[5].mxu1 }
 0x26a   :  { %1474 = vmatprep.subr.msk.mxu0 %vm257_vm3, %v419_v7 }
 0x26b   :  { %1475 = vmatpush3.msk.msra.mxu0 %vm257_vm3, %v419_v7 }
 0x26c   :  { %1477 = vmatmul.mubr.msk.f32.vlgmr.msra.gmra.mrb[10].mxu0 %vm244_vm2, %v1879_v11  ;;  %1543 = vmatprep.subr.bf16.mxu0 %v1788_v16  ;;  %v735_v16 = vadd.f32 %v1904_v15, %v1902_v14 }
 0x26d   :  { %1479 = vmatprep.mubr.msk.f32.mxu0 %vm244_vm2, %v1885_v12 }
 0x270   :  { %1480 = vmatmul.mubr.msk.f32.gmra.mrb[12].mxu0 %vm244_vm2, %v1896_v13 }
 0x271   :  { %806 = vmatprep.mubr.f32.mxu0 %v1821_v43 }
 0x272   :  { %1545 = vmatpush1.bf16.xpose.msra.mxu0 %v1790_v17  ;;  %v46_v17 = vld [vmem:[%s2030_s6 + $0x8] sm:$0xff]  ;;  %s1695_s6 = smov [#allocation5]  }
 0x273   :  { %v1922_v21 = vpack.c.bf16 %v48_v20, %v46_v17  ;;  %s1340_s22 = sshll.u32 %s1695_s6, 4  ;;  %s1341_s22 = int_to_ptr.vmem [resolvable:$true] %s1340_s22 }
 0x274   :  { %s1661_s23 = scalar_lea.vmem %s1341_s22, 2048  ;;  %p1666_p9 = scmp.lt.s32.totalorder %s1341_s22, %s1341_s22 }
 0x275   :  { %1538 = vmatprep.subr.msk.bf16.mxu1 %vm1924_vm6, %v1922_v21  ;;  %p1662_p8 = scmp.ne.s32.totalorder %s1341_s22, %s1661_s23  ;;  %p1667_p10 = scmp.lt.s32.totalorder %s1661_s23, %s1661_s23 }
 0x276   :  { %1541 = vmatpush1.bf16.msk.msra.mxu1 %vm1924_vm6, %v1937_v25 }
 0x277   :  { %1546 = vmatprep.subr.bf16.mxu1 %v1690_v18  ;;  %p1668_p11 = por %p1667_p10, %p1666_p9 }
 0x279   :  { %807 = vmatmul.mubr.f32.vlgmr.msra.gmra.mrb[14].mxu0 %v1819_v42  ;;  %p1669_p12 = pnand %p1668_p11, %p1662_p8 }
 0x27a   :  { %811 = vmatprep.mubr.f32.mxu0 %v1827_v46 }
 0x27d   :  { %812 = vmatmul.mubr.f32.gmra.mrb[16].mxu0 %v1823_v44 }
 0x27e   :  { %816 = vmatprep.mubr.f32.mxu0 %v1833_v50 }
 0x280   :  { %736 = vadd.xlane.f32.xlu0 %v735_v16 }
 0x281   :  { %817 = vmatmul.mubr.f32.gmra.mrb[18].mxu0 %v1831_v49 }
 0x282   :  { %821 = vmatprep.mubr.f32.mxu0 %v1904_v15 }
 0x285   :  { %822 = vmatmul.mubr.f32.gmra.mrb[20].mxu0 %v1902_v14 }
 0x286   :  { %1514 = vmatprep.mubr.msk.f32.mxu0 %vm244_vm2, %v55_v59 }
 0x296   :  { %537 = vperm.xlu0 %1574, %v1462_v62  }
 0x2df   :  { %v528_v39 = vpop.permute.xlu1 %527 }
 0x2e0   :  { %v523_v29 = vpop.permute.xlu0 %522 }
 0x2e4   :  { %v533_v52 = vpop.permute.xlu1 %532 }
 0x30d   :  { %v737_v35 = vpop.xlane.xlu0 %736 }
 0x30e   :  { %v741_v40 = vmul.f32 0.00390625, %v737_v35 }
 0x310   :  { %v1550_v51 = vpack.c.bf16 %v741_v40, %v740_v38 }
 0x315   :  { %v538_v54 = vpop.permute.xlu0 %537 }
 0x33f   :  { %v1478_v33 = vpop.f32.mrb[10].mxu0 }
 0x340   :  { %v501_v34 = vpop.f32.mrb[11].mxu0  ;;  %v541_v48 = vadd.f32 %v1478_v33, %v528_v39 }
 0x341   :  { %v540_v36 = vadd.f32 %v523_v29, %v501_v34 }
 0x343   :  { %v1481_v45 = vpop.f32.mrb[12].mxu0  ;;  %1366 = vmatmul.mubr.msk.f32.vlgmr.msra.gmra.mrb[6].mxu1 %vm544_vm7, %v540_v36 }
 0x344   :  { %1548 = vmatpush3.bf16.msra.mxu1 %v1547_v37  ;;  %v511_v47 = vpop.f32.mrb[13].mxu0  ;;  %634 = vmatprep.mubr.f32.mxu1 %v1692_v19  ;;  %v543_v59 = vadd.f32 %v1481_v45, %v538_v54 }
 0x345   :  { %1549 = vmatprep.subr.bf16.mxu1 %v1690_v18  ;;  %v542_v53 = vadd.f32 %v533_v52, %v511_v47 }
 0x347   :  { %1367 = vmatmul.mubr.msk.f32.gmra.mrb[8].mxu1 %vm544_vm7, %v541_v48 }
 0x348   :  { %1551 = vmatpush3.bf16.msra.mxu1 %v1550_v51  ;;  %640 = vmatprep.mubr.f32.mxu1 %v1692_v19 }
 0x34b   :  { %1368 = vmatmul.mubr.msk.f32.gmra.mrb[10].mxu1 %vm544_vm7, %v542_v53 }
 0x34c   :  { %646 = vmatprep.mubr.f32.mxu1 %v1692_v19  ;;  %v808_v60 = vpop.f32.mrb[14].mxu0 }
 0x34d   :  { %v810_v61 = vpop.f32.mrb[15].mxu0 }
 0x34f   :  { %1369 = vmatmul.mubr.msk.f32.gmra.mrb[12].mxu1 %vm544_vm7, %v543_v59 }
 0x350   :  { %1490 = vmatprep.mubr.msk.f32.mxu1 %vm1691_vm0, %v1692_v19  ;;  %v813_v62 = vpop.f32.mrb[16].mxu0 }
 0x351   :  { %v1553_v63 = vpack.c.bf16 %v813_v62, %v808_v60  ;;  %v815_v3 = vpop.f32.mrb[17].mxu0 }
 0x353   :  { %1491 = vmatmul.mubr.msk.f32.vlgmr.msra.gmra.mrb[14].mxu1 %vm169_vm1, %v1808_v30 }
 0x354   :  { %1495 = vmatprep.mubr.msk.f32.mxu1 %vm244_vm2, %v1815_v41  ;;  %v818_v7 = vpop.f32.mrb[18].mxu0 }
 0x355   :  { %v820_v10 = vpop.f32.mrb[19].mxu0 }
 0x358   :  { %v823_v16 = vpop.f32.mrb[20].mxu0 }
 0x359   :  { %v1556_v17 = vpack.c.bf16 %v823_v16, %v818_v7  ;;  %v825_v20 = vpop.f32.mrb[21].mxu0 }
 0x416   :  { %v630_v23 = vpop.f32.mrb[6].mxu1 }
 0x417   :  { %v1370_v24 = vmul.f32 -1.442695, %v630_v23  ;;  %v632_v26 = vpop.f32.mrb[7].mxu1 }
 0x418   :  { %v1371_v27 = vmul.f32 -1.442695, %v632_v26 }
 0x419   :  { %1575 = vpow2.f32 %v1370_v24 }
 0x41a   :  { %1577 = vpow2.f32 %v1371_v27  ;;  %v636_v30 = vpop.f32.mrb[8].mxu1 }
 0x41b   :  { %v1372_v28 = vmul.f32 -1.442695, %v636_v30  ;;  %v638_v29 = vpop.f32.mrb[9].mxu1 }
 0x41c   :  { %v1373_v41 = vmul.f32 -1.442695, %v638_v29 }
 0x41d   :  { %1579 = vpow2.f32 %v1372_v28 }
 0x41e   :  { %1581 = vpow2.f32 %v1373_v41  ;;  %v642_v31 = vpop.f32.mrb[10].mxu1 }
 0x41f   :  { %v1374_v32 = vmul.f32 -1.442695, %v642_v31  ;;  %v644_v33 = vpop.f32.mrb[11].mxu1 }
 0x420   :  { %v1375_v34 = vmul.f32 -1.442695, %v644_v33 }
 0x421   :  { %1583 = vpow2.f32 %v1374_v32 }
 0x422   :  { %1585 = vpow2.f32 %v1375_v34  ;;  %v648_v35 = vpop.f32.mrb[12].mxu1 }
 0x423   :  { %v1576_v36 = vpop.eup %1575  ;;  %v1376_v37 = vmul.f32 -1.442695, %v648_v35  ;;  %v650_v38 = vpop.f32.mrb[13].mxu1 }
 0x424   :  { %v1578_v39 = vpop.eup %1577  ;;  %v677_v40 = vadd.f32 1.0, %v1576_v36  ;;  %v1377_v45 = vmul.f32 -1.442695, %v650_v38 }
 0x425   :  { %v678_v47 = vadd.f32 1.0, %v1578_v39  ;;  %1587 = vpow2.f32 %v1376_v37 }
 0x426   :  { %1589 = vrcp.f32 %v677_v40  ;;  %v893_v48 = vpop.f32.mrb[14].mxu1 }
 0x427   :  { %v1580_v51 = vpop.eup %1579  ;;  %1591 = vrcp.f32 %v678_v47  ;;  %v897_v52 = vmax.f32 %v893_v48, 0.0  ;;  %v1492_v53 = vpop.f32.mrb[15].mxu1 }
 0x428   :  { %v1582_v54 = vpop.eup %1581  ;;  %v679_v59 = vadd.f32 1.0, %v1580_v51  ;;  %1593 = vpow2.f32 %v1377_v45 }
 0x429   :  { %v680_v60 = vadd.f32 1.0, %v1582_v54  ;;  %1493 = vmatprep.subr.msk.mxu1 %vm257_vm3, %v897_v52 }
 0x42a   :  { %1595 = vrcp.f32 %v679_v59  ;;  %1494 = vmatpush3.msk.msra.mxu1 %vm257_vm3, %v897_v52 }
 0x42b   :  { %v1584_v61 = vpop.eup %1583  ;;  %1597 = vrcp.f32 %v680_v60  ;;  %1496 = vmatmul.mubr.msk.f32.vlgmr.msra.gmra.mrb[16].mxu1 %vm244_vm2, %v1840_v55  ;;  %1552 = vmatprep.subr.bf16.mxu1 %v1690_v18 }
 0x42c   :  { %v1586_v62 = vpop.eup %1585  ;;  %v681_v3 = vadd.f32 1.0, %v1584_v61  ;;  %1554 = vmatpush3.bf16.msra.mxu1 %v1553_v63  ;;  %1498 = vmatprep.mubr.msk.f32.mxu1 %vm244_vm2, %v1846_v56 }
 0x42d   :  { %v682_v7 = vadd.f32 1.0, %v1586_v62  ;;  %1555 = vmatprep.subr.bf16.mxu1 %v1690_v18 }
 0x42e   :  { %1599 = vrcp.f32 %v681_v3 }
 0x42f   :  { %v1588_v10 = vpop.eup %1587  ;;  %1601 = vrcp.f32 %v682_v7  ;;  %1499 = vmatmul.mubr.msk.f32.gmra.mrb[18].mxu1 %vm244_vm2, %v1857_v57 }
 0x430   :  { %v1590_v16 = vpop.eup %1589  ;;  %v683_v20 = vadd.f32 1.0, %v1588_v10  ;;  %1557 = vmatpush3.bf16.msra.mxu1 %v1556_v17  ;;  %1509 = vmatprep.mubr.msk.f32.mxu1 %vm1691_vm0, %v1692_v19 }
 0x431   :  { %v1592_v55 = vpop.eup %1591  ;;  %v701_v63 = vmul.f32 %v1590_v16, %v1755_v2  ;;  %1560 = vmatprep.subr.msk.bf16.mxu1 %vm1924_vm6, %v1922_v21 }
 0x432   :  { %v1594_v18 = vpop.eup %1593  ;;  %v702_v56 = vmul.f32 %v1592_v55, %v1759_v4  ;;  %1603 = vrcp.f32 %v683_v20 }
 0x433   :  { %709 = vst [vmem:[#allocation5] sm:$0xff] %v701_v63  ;;  %v684_v23 = vadd.f32 1.0, %v1594_v18  ;;  %1510 = vmatmul.mubr.msk.f32.vlgmr.msra.gmra.mrb[20].mxu1 %vm169_vm1, %v1867_v58 }
 0x434   :  { %v1596_v57 = vpop.eup %1595  ;;  %710 = vst [vmem:[#allocation5 + $0x8] sm:$0xff] %v702_v56  ;;  %1563 = vmatpush1.bf16.msk.msra.mxu1 %vm1924_vm6, %v1937_v25  ;;  %1245 = vmatprep.mubr.f32.mxu1 %v1692_v19 }
 0x435   :  { %v1598_v2 = vpop.eup %1597  ;;  %v703_v21 = vmul.f32 %v1596_v57, %v1767_v8  ;;  %1605 = vrcp.f32 %v684_v23 }
 0x436   :  { %v704_v4 = vmul.f32 %v1598_v2, %v1769_v9 }
 0x437   :  { %711 = vst [vmem:[#allocation5 + $0x10] sm:$0xff] %v703_v21 }
 0x438   :  { %v1600_v17 = vpop.eup %1599  ;;  %712 = vst [vmem:[#allocation5 + $0x18] sm:$0xff] %v704_v4 }
 0x439   :  { %v1602_v24 = vpop.eup %1601  ;;  %v705_v58 = vmul.f32 %v1600_v17, %v1751_v0 }
 0x43a   :  { %v706_v26 = vmul.f32 %v1602_v24, %v1753_v1 }
 0x43b   :  { %713 = vst [vmem:[#allocation5 + $0x20] sm:$0xff] %v705_v58 }
 0x43c   :  { %v1604_v27 = vpop.eup %1603  ;;  %714 = vst [vmem:[#allocation5 + $0x28] sm:$0xff] %v706_v26 }
 0x43d   :  { %v707_v22 = vmul.f32 %v1604_v27, %v1761_v5 }
 0x43f   :  { %v1606_v25 = vpop.eup %1605  ;;  %715 = vst [vmem:[#allocation5 + $0x30] sm:$0xff] %v707_v22 }
 0x440   :  { %v708_v8 = vmul.f32 %v1606_v25, %v1763_v6 }
 0x442   :  { %716 = vst [vmem:[#allocation5 + $0x38] sm:$0xff] %v708_v8 }
 0x4fe   :  { %v1497_v30 = vpop.f32.mrb[16].mxu1 }
 0x4ff   :  { %v967_v9 = vpop.f32.mrb[17].mxu1 }
 0x500   :  { %1147 = vperm.xlu1 %1573, %v967_v9  }
 0x502   :  { %v1500_v28 = vpop.f32.mrb[18].mxu1 }
 0x503   :  { %v977_v29 = vpop.f32.mrb[19].mxu1 }
 0x504   :  { %1152 = vperm.xlu1 %1573, %v1497_v30  }
 0x506   :  { %v1052_v41 = vpop.f32.mrb[20].mxu1 }
 0x507   :  { %v1056_v0 = vmax.f32 %v1052_v41, 0.0  ;;  %v1511_v31 = vpop.f32.mrb[21].mxu1 }
 0x508   :  { %1157 = vperm.xlu1 %1573, %v977_v29  }
 0x509   :  { %1512 = vmatprep.subr.msk.mxu0 %vm257_vm3, %v1056_v0 }
 0x50a   :  { %1513 = vmatpush3.msk.msra.mxu0 %vm257_vm3, %v1056_v0 }
 0x50b   :  { %1515 = vmatmul.mubr.msk.f32.vlgmr.msra.gmra.mrb[22].mxu0 %vm244_vm2, %v1879_v11 }
 0x50c   :  { %1162 = vperm.xlu1 %1573, %v1500_v28   ;;  %1517 = vmatprep.mubr.msk.f32.mxu0 %vm244_vm2, %v1885_v12 }
 0x50f   :  { %1518 = vmatmul.mubr.msk.f32.gmra.mrb[24].mxu0 %vm244_vm2, %v1896_v13 }
 0x57f   :  { %v1148_v1 = vpop.permute.xlu1 %1147 }
 0x583   :  { %v1153_v6 = vpop.permute.xlu1 %1152 }
 0x587   :  { %v1158_v11 = vpop.permute.xlu1 %1157 }
 0x58b   :  { %v1163_v13 = vpop.permute.xlu1 %1162 }
 0x5de   :  { %v1516_v5 = vpop.f32.mrb[22].mxu0 }
 0x5df   :  { %v1126_v32 = vpop.f32.mrb[23].mxu0  ;;  %v1166_v36 = vadd.f32 %v1516_v5, %v1153_v6 }
 0x5e0   :  { %v1165_v33 = vadd.f32 %v1148_v1, %v1126_v32 }
 0x5e2   :  { %v1519_v34 = vpop.f32.mrb[24].mxu0  ;;  %1392 = vmatmul.mubr.msk.f32.vlgmr.msra.gmra.mrb[22].mxu1 %vm544_vm7, %v1165_v33 }
 0x5e3   :  { %v1136_v35 = vpop.f32.mrb[25].mxu0  ;;  %1251 = vmatprep.mubr.f32.mxu1 %v1692_v19  ;;  %v1168_v37 = vadd.f32 %v1519_v34, %v1163_v13 }
 0x5e4   :  { %v1167_v12 = vadd.f32 %v1158_v11, %v1136_v35 }
 0x5e6   :  { %1393 = vmatmul.mubr.msk.f32.gmra.mrb[24].mxu1 %vm544_vm7, %v1166_v36 }
 0x5e7   :  { %1257 = vmatprep.mubr.f32.mxu1 %v1692_v19 }
 0x5ea   :  { %1394 = vmatmul.mubr.msk.f32.gmra.mrb[26].mxu1 %vm544_vm7, %v1167_v12 }
 0x5eb   :  { %1263 = vmatprep.mubr.f32.mxu1 %v1692_v19 }
 0x5ee   :  { %1395 = vmatmul.mubr.msk.f32.gmra.mrb[28].mxu1 %vm544_vm7, %v1168_v37 }
 0x6b5   :  { %v1247_v38 = vpop.f32.mrb[22].mxu1 }
 0x6b6   :  { %v1396_v39 = vmul.f32 -1.442695, %v1247_v38  ;;  %v1249_v40 = vpop.f32.mrb[23].mxu1 }
 0x6b7   :  { %v1397_v45 = vmul.f32 -1.442695, %v1249_v40 }
 0x6b8   :  { %1607 = vpow2.f32 %v1396_v39 }
 0x6b9   :  { %1609 = vpow2.f32 %v1397_v45  ;;  %v1253_v47 = vpop.f32.mrb[24].mxu1 }
 0x6ba   :  { %v1398_v48 = vmul.f32 -1.442695, %v1253_v47  ;;  %v1255_v51 = vpop.f32.mrb[25].mxu1 }
 0x6bb   :  { %v1399_v52 = vmul.f32 -1.442695, %v1255_v51 }
 0x6bc   :  { %1611 = vpow2.f32 %v1398_v48 }
 0x6bd   :  { %1613 = vpow2.f32 %v1399_v52  ;;  %v1259_v53 = vpop.f32.mrb[26].mxu1 }
 0x6be   :  { %v1400_v54 = vmul.f32 -1.442695, %v1259_v53  ;;  %v1261_v59 = vpop.f32.mrb[27].mxu1 }
 0x6bf   :  { %v1401_v60 = vmul.f32 -1.442695, %v1261_v59 }
 0x6c0   :  { %1615 = vpow2.f32 %v1400_v54 }
 0x6c1   :  { %1617 = vpow2.f32 %v1401_v60  ;;  %v1265_v19 = vpop.f32.mrb[28].mxu1 }
 0x6c2   :  { %v1608_v61 = vpop.eup %1607  ;;  %v1402_v62 = vmul.f32 -1.442695, %v1265_v19  ;;  %v1267_v3 = vpop.f32.mrb[29].mxu1 }
 0x6c3   :  { %v1610_v7 = vpop.eup %1609  ;;  %v1294_v10 = vadd.f32 1.0, %v1608_v61  ;;  %v1403_v16 = vmul.f32 -1.442695, %v1267_v3 }
 0x6c4   :  { %v1295_v20 = vadd.f32 1.0, %v1610_v7  ;;  %1619 = vpow2.f32 %v1402_v62 }
 0x6c5   :  { %1621 = vrcp.f32 %v1294_v10 }
 0x6c6   :  { %v1612_v55 = vpop.eup %1611  ;;  %1623 = vrcp.f32 %v1295_v20 }
 0x6c7   :  { %v1614_v63 = vpop.eup %1613  ;;  %v1296_v18 = vadd.f32 1.0, %v1612_v55  ;;  %1625 = vpow2.f32 %v1403_v16 }
 0x6c8   :  { %v1297_v56 = vadd.f32 1.0, %v1614_v63 }
 0x6c9   :  { %1627 = vrcp.f32 %v1296_v18 }
 0x6ca   :  { %v1616_v23 = vpop.eup %1615  ;;  %1629 = vrcp.f32 %v1297_v56 }
 0x6cb   :  { %v1618_v57 = vpop.eup %1617  ;;  %v1298_v2 = vadd.f32 1.0, %v1616_v23 }
 0x6cc   :  { %v1299_v21 = vadd.f32 1.0, %v1618_v57 }
 0x6cd   :  { %1631 = vrcp.f32 %v1298_v2 }
 0x6ce   :  { %v1620_v4 = vpop.eup %1619  ;;  %1633 = vrcp.f32 %v1299_v21 }
 0x6cf   :  { %v1622_v17 = vpop.eup %1621  ;;  %v1300_v24 = vadd.f32 1.0, %v1620_v4 }
 0x6d0   :  { %v1624_v58 = vpop.eup %1623  ;;  %v1318_v26 = vmul.f32 %v1622_v17, %v1819_v42 }
 0x6d1   :  { %v1626_v27 = vpop.eup %1625  ;;  %v1319_v22 = vmul.f32 %v1624_v58, %v1821_v43  ;;  %1635 = vrcp.f32 %v1300_v24 }
 0x6d2   :  { %1327 = vst [vmem:[#allocation5 + $0x40] sm:$0xff] %v1318_v26  ;;  %v1301_v25 = vadd.f32 1.0, %v1626_v27 }
 0x6d3   :  { %v1628_v8 = vpop.eup %1627  ;;  %1328 = vst [vmem:[#allocation5 + $0x48] sm:$0xff] %v1319_v22 }
 0x6d4   :  { %v1630_v30 = vpop.eup %1629  ;;  %v1320_v9 = vmul.f32 %v1628_v8, %v1823_v44  ;;  %1637 = vrcp.f32 %v1301_v25 }
 0x6d5   :  { %v1321_v28 = vmul.f32 %v1630_v30, %v1827_v46 }
 0x6d6   :  { %1329 = vst [vmem:[#allocation5 + $0x50] sm:$0xff] %v1320_v9 }
 0x6d7   :  { %v1632_v29 = vpop.eup %1631  ;;  %1330 = vst [vmem:[#allocation5 + $0x58] sm:$0xff] %v1321_v28 }
 0x6d8   :  { %v1634_v41 = vpop.eup %1633  ;;  %v1322_v42 = vmul.f32 %v1632_v29, %v1831_v49 }
 0x6d9   :  { %v1323_v0 = vmul.f32 %v1634_v41, %v1833_v50 }
 0x6da   :  { %1331 = vst [vmem:[#allocation5 + $0x60] sm:$0xff] %v1322_v42 }
 0x6db   :  { %v1636_v43 = vpop.eup %1635  ;;  %1332 = vst [vmem:[#allocation5 + $0x68] sm:$0xff] %v1323_v0 }
 0x6dc   :  { %v1324_v31 = vmul.f32 %v1636_v43, %v1902_v14 }
 0x6de   :  { %v1638_v1 = vpop.eup %1637  ;;  %1333 = vst [vmem:[#allocation5 + $0x70] sm:$0xff] %v1324_v31 }
 0x6df   :  { %v1325_v44 = vmul.f32 %v1638_v1, %v1904_v15 }
 0x6e1   :  { %1334 = vst [vmem:[#allocation5 + $0x78] sm:$0xff] %v1325_v44 }
 0x6e2   :  { %1672 = shalt.err (!%p1669_p12)
}
 0x6e3   :  { %s1673_s25 = scalar_lea.hbm %s2031_s7, 2048 }
 0x6e4   :  { %p1674_p13 = scmp.ne.s32.totalorder %s2031_s7, %s1673_s25  ;;  %p1677_p0 = scmp.lt.u32.totalorder %s1673_s25, %s2031_s7 }
 0x6e6   :  { %p1679_p1 = pnand %p1677_p0, %p1674_p13 }
 0x6e8   :  { %1682 = shalt.err (!%p1679_p1)
}
 0x6e9   :  { %1346 = dma.vmem_to_hbm [thread:$0]  %s1341_s22, 2048, %s2031_s7, [#allocation4], %s1688_s11, %s1688_s11, %s1689_s12  }
 0x6ea   :  { %1685 = dma.done.wait [#allocation4], 2048  }
 0x6eb   :  { %1686 = vsyncadd [#allocation4], 4294965248 }
 0x6ec   :  { %1350 = vsyncpa [#allocation3], 1 }
 0x6ed   :  { %1351 = vsyncpa [#allocation4], 1 }

</bundles_post_ra>
